<compile_context>
chip_gen: v7x
topology: tpu7x:2x2x1
jax: 0.10.0
libtpu: 0.0.40
codegen_flags: <defaults>
</compile_context>

<pallas_src>
import jax
import jax.numpy as jnp
import numpy as np
from jax.experimental import pallas as pl
from jax.experimental.pallas import tpu as pltpu

# ---- problem sizes (small, consistent with the module) ----
B, Hh, Ww_, C, R = 2, 8, 8, 32, 4
L = Hh * Ww_                 # 64 sequence positions per batch
N = B * L                    # 128 columns in the fused, transposed slab
M = C // R                   # EA bottleneck channels
P2 = 2 * B * Hh              # stacked pooled width (h-block + w-block) = 32
EPS = 1e-5                   # nn.LayerNorm default

# packed parameter-slab row offsets (all multiples of 8)
T1 = 3 * M                   # 24   end of EA conv1 taps
T2 = T1 + 6 * C              # 216  end of stacked CA conv taps
T3 = T2 + N                  # 344  end of pool_prev
T4 = T3 + N                  # 472  end of pool_mid
T5 = T4 + N                  # 600  end of pool_next
T6 = T5 + C                  # 632  end of channel-param block
EXP_ROWS = P2 + 8            # 40   expand slab rows (e_h, e_w, 2 masks, pad)


# ----------------------------------------------------------------------------
# Pallas kernel: full EACA forward, transposed (C, N) layout, single invocation.
# ----------------------------------------------------------------------------
def eaca_kernel(x_ref, slab_ref, exp_ref, o_ref):
    x = x_ref[...]                                    # (C, N) float32, lane-dense

    # ---- unpack packed parameter slabs (static sublane slices) ----
    w1_0 = slab_ref[0:M, :]                           # (M, C)  EA conv1 tap k=0
    w1_1 = slab_ref[M:2 * M, :]
    w1_2 = slab_ref[2 * M:T1, :]
    ws_0 = slab_ref[T1:T1 + 2 * C, :]                 # (2C, C) [wh_k; ww_k]
    ws_1 = slab_ref[T1 + 2 * C:T1 + 4 * C, :]
    ws_2 = slab_ref[T1 + 4 * C:T2, :]
    pool_prev = slab_ref[T2:T3, :]                    # (N, P2) pre-shifted pooling
    pool_mid = slab_ref[T3:T4, :]
    pool_next = slab_ref[T4:T5, :]
    cpar = slab_ref[T5:T6, :]                         # (C, C) small channel params
    w2 = cpar[:, 0:M]                                 # (C, M)  EA conv2 (1x1)
    g_ea = cpar[:, M:M + 1]                           # (C, 1)
    b_ea = cpar[:, M + 1:M + 2]
    g_ca = cpar[:, M + 2:M + 3]
    b_ca = cpar[:, M + 3:M + 4]

    e_h = exp_ref[0:P2 // 2, :]                       # (BH, N) expansion
    e_w = exp_ref[P2 // 2:P2, :]                      # (BW, N)
    mask_prev = exp_ref[P2:P2 + 1, :]                 # (1, N) EA boundary masks
    mask_next = exp_ref[P2 + 1:P2 + 2, :]

    def layer_norm_t(v, g, b):
        # normalize over the channel (sublane) axis; v: (C, N), g/b: (C, 1)
        mu = jnp.mean(v, axis=0, keepdims=True)
        var = jnp.mean((v - mu) ** 2, axis=0, keepdims=True)
        return (v - mu) * jax.lax.rsqrt(var + EPS) * g + b

    # ---------------- ExternalDependencyAttention ----------------
    # Conv1d(k=3, pad=1) over the sequence = 3 per-tap matmuls on shifted x.
    x_prev = pltpu.roll(x, 1, axis=1) * mask_prev         # col j <- x[:, j-1]
    x_next = pltpu.roll(x, N - 1, axis=1) * mask_next     # col j <- x[:, j+1]
    a1 = jax.nn.sigmoid(
        jnp.dot(w1_0, x_prev, preferred_element_type=jnp.float32)
        + jnp.dot(w1_1, x, preferred_element_type=jnp.float32)
        + jnp.dot(w1_2, x_next, preferred_element_type=jnp.float32))     # (M, N)
    out_ea = jnp.dot(w2, a1, preferred_element_type=jnp.float32)         # (C, N)
    y_ea = layer_norm_t(x + out_ea, g_ea, b_ea)

    # ---------------- CrossSpatialAttention ----------------
    # Stacked pooled branches [x_h | x_w]; sequence shifts pre-folded into the
    # pooling matrices, both convs share one stacked weight per tap.
    st_prev = jnp.dot(x, pool_prev, preferred_element_type=jnp.float32)  # (C, P2)
    st_mid = jnp.dot(x, pool_mid, preferred_element_type=jnp.float32)
    st_next = jnp.dot(x, pool_next, preferred_element_type=jnp.float32)
    conv_full = (jnp.dot(ws_0, st_prev, preferred_element_type=jnp.float32)
                 + jnp.dot(ws_1, st_mid, preferred_element_type=jnp.float32)
                 + jnp.dot(ws_2, st_next, preferred_element_type=jnp.float32))  # (2C, P2)
    attn_h = jax.nn.sigmoid(conv_full[0:C, 0:P2 // 2])          # (C, BH)
    attn_w = jax.nn.sigmoid(conv_full[C:2 * C, P2 // 2:P2])     # (C, BW)
    attn = (jnp.dot(attn_h, e_h, preferred_element_type=jnp.float32)
            * jnp.dot(attn_w, e_w, preferred_element_type=jnp.float32))  # (C, N)
    y_ca = layer_norm_t(x + x * attn, g_ca, b_ca)

    o_ref[...] = y_ea + y_ca


def eaca_pallas(x, slab, e_slab):
    Bx, Lx, Cx = x.shape
    n = Bx * Lx
    assert Cx == C and n == N and Lx == L, "shape mismatch vs compiled constants"
    x_t = jnp.transpose(x.reshape(n, Cx))              # (C, N), lane-dense

    flops = 2 * (3 * M * C * N                         # EA conv1 taps
                 + C * M * N                           # EA conv2 (1x1)
                 + 3 * C * N * P2                      # stacked pooling matmuls
                 + 3 * (2 * C) * C * P2                # stacked CA conv taps
                 + 2 * C * (P2 // 2) * N)              # expansion matmuls
    transcendentals = M * N + 2 * C * (P2 // 2) + 2 * N   # sigmoids + rsqrt
    bytes_accessed = 4 * (x_t.size + slab.size + e_slab.size + C * N)

    out_t = pl.pallas_call(
        eaca_kernel,
        out_shape=jax.ShapeDtypeStruct((C, n), jnp.float32),
        cost_estimate=pl.CostEstimate(flops=flops,
                                      transcendentals=transcendentals,
                                      bytes_accessed=bytes_accessed),
    )(x_t, slab, e_slab)
    return jnp.transpose(out_t).reshape(Bx, Lx, Cx)


# ----------------------------------------------------------------------------
# Host-side parameter packing.
#   slab (T6, C):  [w1 taps | stacked CA conv taps | pool_prev | pool_mid |
#                   pool_next | (w2, LN gammas/betas)]
#   e_slab (P2+8, N): [E_h ; E_w ; EA prev-mask ; EA next-mask ; pad]
# ----------------------------------------------------------------------------
def build_packed_params(w1_pt, w2_pt, wh_pt, ww_pt, g_ea, b_ea, g_ca, b_ca):
    assert Hh == Ww_, "stacked CA branch requires H == W"
    assert L % Hh == 0 and N % L == 0 and P2 % Hh == 0, "segment tiling broken"

    w1_pt = np.asarray(w1_pt); w2_pt = np.asarray(w2_pt)
    wh_pt = np.asarray(wh_pt); ww_pt = np.asarray(ww_pt)

    # EA conv1 taps (3M, C); tap k=0 multiplies x_{l-1}, k=1 x_l, k=2 x_{l+1}
    w1_taps = np.concatenate([w1_pt[:, :, k] for k in range(3)],
                             axis=0).astype(np.float32)
    # stacked CA conv taps: per k, [wh_k; ww_k] (2C, C); concat over k -> (6C, C)
    ws_taps = np.concatenate(
        [np.concatenate([wh_pt[:, :, k], ww_pt[:, :, k]], axis=0) for k in range(3)],
        axis=0).astype(np.float32)

    # pooling / expansion constants.  column n = b*L + h*W + w
    rows = np.arange(N)
    b_idx = rows // L
    h_idx = (rows % L) // Ww_
    w_idx = rows % Ww_
    e_h = np.zeros((B * Hh, N), np.float32); e_h[b_idx * Hh + h_idx, rows] = 1.0
    e_w = np.zeros((B * Ww_, N), np.float32); e_w[b_idx * Ww_ + w_idx, rows] = 1.0
    pool_mid = np.concatenate([e_h.T / Ww_, e_w.T / Hh], axis=1)     # (N, P2)
    # fold the +/-1 sequence shift (per segment of length H, zero padded) into
    # the pooling matrices so the CA branch needs no roll/mask in-kernel.
    pool_prev = np.zeros_like(pool_mid)
    pool_next = np.zeros_like(pool_mid)
    for p in range(P2):
        if p % Hh != 0:
            pool_prev[:, p] = pool_mid[:, p - 1]
        if p % Hh != Hh - 1:
            pool_next[:, p] = pool_mid[:, p + 1]

    # channel-indexed small params block (C, C)
    cpar = np.zeros((C, C), np.float32)
    cpar[:, 0:M] = w2_pt[:, :, 0]
    cpar[:, M] = np.asarray(g_ea)
    cpar[:, M + 1] = np.asarray(b_ea)
    cpar[:, M + 2] = np.asarray(g_ca)
    cpar[:, M + 3] = np.asarray(b_ca)

    slab = np.concatenate(
        [w1_taps, ws_taps, pool_prev, pool_mid, pool_next, cpar], axis=0)
    assert slab.shape == (T6, C)

    e_slab = np.zeros((EXP_ROWS, N), np.float32)
    e_slab[0:B * Hh] = e_h
    e_slab[B * Hh:P2] = e_w
    e_slab[P2] = (rows % L != 0).astype(np.float32)           # EA prev-tap mask
    e_slab[P2 + 1] = (rows % L != L - 1).astype(np.float32)   # EA next-tap mask

    return jnp.asarray(slab), jnp.asarray(e_slab)


# ----------------------------------------------------------------------------
# Pure-JAX reference mirroring the PyTorch module (NCL / NCHW layout).
# ----------------------------------------------------------------------------
def conv1d_ref(x_ncl, w):            # x: (B, Cin, N), w: (Cout, Cin, K)
    K = w.shape[-1]
    pad = (K - 1) // 2
    xp = jnp.pad(x_ncl, ((0, 0), (0, 0), (pad, pad)))
    n = x_ncl.shape[-1]
    out = 0.0
    for k in range(K):
        out = out + jnp.einsum('bcl,oc->bol', xp[:, :, k:k + n], w[:, :, k])
    return out


def layer_norm_ref(v, g, b):
    mu = jnp.mean(v, axis=-1, keepdims=True)
    var = jnp.mean((v - mu) ** 2, axis=-1, keepdims=True)
    return (v - mu) / jnp.sqrt(var + EPS) * g + b


def eaca_ref(x, pt_params):
    w1_pt, w2_pt, g_ea, b_ea, wh_pt, ww_pt, g_ca, b_ca = pt_params
    # EA
    xt = jnp.transpose(x, (0, 2, 1))                      # (B, C, L)
    a1 = jax.nn.sigmoid(conv1d_ref(xt, w1_pt))            # (B, M, L)
    out_ea = jnp.transpose(conv1d_ref(a1, w2_pt), (0, 2, 1))
    y_ea = layer_norm_ref(x + out_ea, g_ea, b_ea)
    # CA
    x_hw = jnp.transpose(x, (0, 2, 1)).reshape(B, C, Hh, Ww_)
    x_h = x_hw.mean(axis=3)                               # (B, C, H)
    x_w = x_hw.mean(axis=2)                               # (B, C, W)
    ah = jax.nn.sigmoid(conv1d_ref(x_h, wh_pt))
    aw = jax.nn.sigmoid(conv1d_ref(x_w, ww_pt))
    attn = ah[:, :, :, None] * aw[:, :, None, :]          # (B, C, H, W)
    out_ca = (x_hw * attn).reshape(B, C, L).transpose(0, 2, 1)
    y_ca = layer_norm_ref(x + out_ca, g_ca, b_ca)
    return y_ea + y_ca


# ----------------------------------------------------------------------------
if __name__ == "__main__":
    key = jax.random.PRNGKey(0)
    ks = jax.random.split(key, 8)

    x = jax.random.normal(ks[0], (B, L, C), dtype=jnp.float32)

    # deterministic synthetic parameters (PyTorch conv weight layout (Cout, Cin, K))
    w1_pt = jax.random.normal(ks[1], (M, C, 3), dtype=jnp.float32) * 0.1
    w2_pt = jax.random.normal(ks[2], (C, M, 1), dtype=jnp.float32) * 0.1
    wh_pt = jax.random.normal(ks[3], (C, C, 3), dtype=jnp.float32) * 0.1
    ww_pt = jax.random.normal(ks[4], (C, C, 3), dtype=jnp.float32) * 0.1
    g_ea = 1.0 + 0.1 * jax.random.normal(ks[5], (C,), dtype=jnp.float32)
    b_ea = 0.1 * jax.random.normal(ks[6], (C,), dtype=jnp.float32)
    g_ca = jnp.ones((C,), dtype=jnp.float32)
    b_ca = jnp.zeros((C,), dtype=jnp.float32)

    slab, e_slab = build_packed_params(w1_pt, w2_pt, wh_pt, ww_pt,
                                       g_ea, b_ea, g_ca, b_ca)

    out = jax.block_until_ready(eaca_pallas(x, slab, e_slab))

    ref_params = (w1_pt, w2_pt, g_ea, b_ea, wh_pt, ww_pt, g_ca, b_ca)
    ref = jax.block_until_ready(eaca_ref(x, ref_params))
    np.testing.assert_allclose(np.asarray(out), np.asarray(ref),
                               rtol=2e-4, atol=2e-4)

    print("KERNEL_OK")
</pallas_src>

<mosaic_0001>
module attributes {stable_mosaic.version = 11 : i64} {
  func.func @eaca_kernel(%arg0: memref<32x128xf32, #tpu.memory_space<vmem>>, %arg1: memref<632x32xf32, #tpu.memory_space<vmem>>, %arg2: memref<40x128xf32, #tpu.memory_space<vmem>>, %arg3: memref<32x128xf32, #tpu.memory_space<vmem>>) attributes {dimension_semantics = [], scalar_prefetch = 0 : i64, scratch_operands = 0 : i64, tpu.core_type = #tpu.core_type<tc>} {
    %c0 = arith.constant 0 : index
    %c0_0 = arith.constant 0 : index
    %0 = vector.load %arg0[%c0, %c0_0] : memref<32x128xf32, #tpu.memory_space<vmem>>, vector<32x128xf32>
    %c0_1 = arith.constant 0 : index
    %c0_2 = arith.constant 0 : index
    %1 = vector.load %arg1[%c0_1, %c0_2] : memref<632x32xf32, #tpu.memory_space<vmem>>, vector<8x32xf32>
    %c8 = arith.constant 8 : index
    %c0_3 = arith.constant 0 : index
    %2 = vector.load %arg1[%c8, %c0_3] : memref<632x32xf32, #tpu.memory_space<vmem>>, vector<8x32xf32>
    %c16 = arith.constant 16 : index
    %c0_4 = arith.constant 0 : index
    %3 = vector.load %arg1[%c16, %c0_4] : memref<632x32xf32, #tpu.memory_space<vmem>>, vector<8x32xf32>
    %c24 = arith.constant 24 : index
    %c0_5 = arith.constant 0 : index
    %4 = vector.load %arg1[%c24, %c0_5] : memref<632x32xf32, #tpu.memory_space<vmem>>, vector<64x32xf32>
    %c88 = arith.constant 88 : index
    %c0_6 = arith.constant 0 : index
    %5 = vector.load %arg1[%c88, %c0_6] : memref<632x32xf32, #tpu.memory_space<vmem>>, vector<64x32xf32>
    %c152 = arith.constant 152 : index
    %c0_7 = arith.constant 0 : index
    %6 = vector.load %arg1[%c152, %c0_7] : memref<632x32xf32, #tpu.memory_space<vmem>>, vector<64x32xf32>
    %c216 = arith.constant 216 : index
    %c0_8 = arith.constant 0 : index
    %7 = vector.load %arg1[%c216, %c0_8] : memref<632x32xf32, #tpu.memory_space<vmem>>, vector<128x32xf32>
    %c344 = arith.constant 344 : index
    %c0_9 = arith.constant 0 : index
    %8 = vector.load %arg1[%c344, %c0_9] : memref<632x32xf32, #tpu.memory_space<vmem>>, vector<128x32xf32>
    %c472 = arith.constant 472 : index
    %c0_10 = arith.constant 0 : index
    %9 = vector.load %arg1[%c472, %c0_10] : memref<632x32xf32, #tpu.memory_space<vmem>>, vector<128x32xf32>
    %c600 = arith.constant 600 : index
    %c0_11 = arith.constant 0 : index
    %10 = vector.load %arg1[%c600, %c0_11] : memref<632x32xf32, #tpu.memory_space<vmem>>, vector<32x32xf32>
    %11 = vector.extract_strided_slice %10 {offsets = [0, 0], sizes = [32, 8], strides = [1, 1]} : vector<32x32xf32> to vector<32x8xf32>
    %12 = vector.extract_strided_slice %10 {offsets = [0, 8], sizes = [32, 1], strides = [1, 1]} : vector<32x32xf32> to vector<32x1xf32>
    %13 = vector.extract_strided_slice %10 {offsets = [0, 9], sizes = [32, 1], strides = [1, 1]} : vector<32x32xf32> to vector<32x1xf32>
    %14 = vector.extract_strided_slice %10 {offsets = [0, 10], sizes = [32, 1], strides = [1, 1]} : vector<32x32xf32> to vector<32x1xf32>
    %15 = vector.extract_strided_slice %10 {offsets = [0, 11], sizes = [32, 1], strides = [1, 1]} : vector<32x32xf32> to vector<32x1xf32>
    %c0_12 = arith.constant 0 : index
    %c0_13 = arith.constant 0 : index
    %16 = vector.load %arg2[%c0_12, %c0_13] : memref<40x128xf32, #tpu.memory_space<vmem>>, vector<16x128xf32>
    %c16_14 = arith.constant 16 : index
    %c0_15 = arith.constant 0 : index
    %17 = vector.load %arg2[%c16_14, %c0_15] : memref<40x128xf32, #tpu.memory_space<vmem>>, vector<16x128xf32>
    %c32 = arith.constant 32 : index
    %c0_16 = arith.constant 0 : index
    %18 = vector.load %arg2[%c32, %c0_16] : memref<40x128xf32, #tpu.memory_space<vmem>>, vector<1x128xf32>
    %c33 = arith.constant 33 : index
    %c0_17 = arith.constant 0 : index
    %19 = vector.load %arg2[%c33, %c0_17] : memref<40x128xf32, #tpu.memory_space<vmem>>, vector<1x128xf32>
    %c1_i32 = arith.constant 1 : i32
    %20 = tpu.dynamic_rotate %0 by %c1_i32 dim 1 : vector<32x128xf32>, i32 -> vector<32x128xf32>
    %21 = vector.broadcast %18 : vector<1x128xf32> to vector<32x128xf32>
    %22 = arith.mulf %20, %21 : vector<32x128xf32>
    %c127_i32 = arith.constant 127 : i32
    %23 = tpu.dynamic_rotate %0 by %c127_i32 dim 1 : vector<32x128xf32>, i32 -> vector<32x128xf32>
    %24 = vector.broadcast %19 : vector<1x128xf32> to vector<32x128xf32>
    %25 = arith.mulf %23, %24 : vector<32x128xf32>
    %cst = arith.constant dense<0.000000e+00> : vector<8x128xf32>
    %26 = tpu.matmul %1, %22, %cst {dimension_numbers = #tpu.dot_dimension_numbers<[1], [0], [0], [1], [0, 0, 1, 1], [], []>} : vector<8x32xf32>, vector<32x128xf32>, vector<8x128xf32> -> vector<8x128xf32>
    %cst_18 = arith.constant dense<0.000000e+00> : vector<8x128xf32>
    %27 = tpu.matmul %2, %0, %cst_18 {dimension_numbers = #tpu.dot_dimension_numbers<[1], [0], [0], [1], [0, 0, 1, 1], [], []>} : vector<8x32xf32>, vector<32x128xf32>, vector<8x128xf32> -> vector<8x128xf32>
    %28 = arith.addf %26, %27 : vector<8x128xf32>
    %cst_19 = arith.constant dense<0.000000e+00> : vector<8x128xf32>
    %29 = tpu.matmul %3, %25, %cst_19 {dimension_numbers = #tpu.dot_dimension_numbers<[1], [0], [0], [1], [0, 0, 1, 1], [], []>} : vector<8x32xf32>, vector<32x128xf32>, vector<8x128xf32> -> vector<8x128xf32>
    %30 = arith.addf %28, %29 : vector<8x128xf32>
    %31 = arith.negf %30 : vector<8x128xf32>
    %32 = math.exp %31 : vector<8x128xf32>
    %cst_20 = arith.constant 1.000000e+00 : f32
    %33 = vector.broadcast %cst_20 : f32 to vector<8x128xf32>
    %34 = arith.addf %33, %32 : vector<8x128xf32>
    %35 = arith.divf %33, %34 : vector<8x128xf32>
    %cst_21 = arith.constant dense<0.000000e+00> : vector<32x128xf32>
    %36 = tpu.matmul %11, %35, %cst_21 {dimension_numbers = #tpu.dot_dimension_numbers<[1], [0], [0], [1], [0, 0, 1, 1], [], []>} : vector<32x8xf32>, vector<8x128xf32>, vector<32x128xf32> -> vector<32x128xf32>
    %37 = arith.addf %0, %36 : vector<32x128xf32>
    %cst_22 = arith.constant dense<0.000000e+00> : vector<128xf32>
    %38 = vector.multi_reduction <add>, %37, %cst_22 [0] : vector<32x128xf32> to vector<128xf32>
    %39 = vector.shape_cast %38 : vector<128xf32> to vector<1x128xf32>
    %cst_23 = arith.constant 3.200000e+01 : f32
    %40 = vector.broadcast %cst_23 : f32 to vector<1x128xf32>
    %41 = arith.divf %39, %40 : vector<1x128xf32>
    %42 = vector.broadcast %41 : vector<1x128xf32> to vector<32x128xf32>
    %43 = arith.subf %37, %42 : vector<32x128xf32>
    %44 = arith.mulf %43, %43 : vector<32x128xf32>
    %cst_24 = arith.constant dense<0.000000e+00> : vector<128xf32>
    %45 = vector.multi_reduction <add>, %44, %cst_24 [0] : vector<32x128xf32> to vector<128xf32>
    %46 = vector.shape_cast %45 : vector<128xf32> to vector<1x128xf32>
    %cst_25 = arith.constant 3.200000e+01 : f32
    %47 = vector.broadcast %cst_25 : f32 to vector<1x128xf32>
    %48 = arith.divf %46, %47 : vector<1x128xf32>
    %49 = vector.broadcast %41 : vector<1x128xf32> to vector<32x128xf32>
    %50 = arith.subf %37, %49 : vector<32x128xf32>
    %cst_26 = arith.constant 9.99999974E-6 : f32
    %51 = vector.broadcast %cst_26 : f32 to vector<1x128xf32>
    %52 = arith.addf %48, %51 : vector<1x128xf32>
    %53 = math.rsqrt %52 : vector<1x128xf32>
    %54 = vector.broadcast %53 : vector<1x128xf32> to vector<32x128xf32>
    %55 = arith.mulf %50, %54 : vector<32x128xf32>
    %56 = vector.broadcast %12 : vector<32x1xf32> to vector<32x128xf32>
    %57 = arith.mulf %55, %56 : vector<32x128xf32>
    %58 = vector.broadcast %13 : vector<32x1xf32> to vector<32x128xf32>
    %59 = arith.addf %57, %58 : vector<32x128xf32>
    %cst_27 = arith.constant dense<0.000000e+00> : vector<32x32xf32>
    %60 = tpu.matmul %0, %7, %cst_27 {dimension_numbers = #tpu.dot_dimension_numbers<[1], [0], [0], [1], [0, 0, 1, 1], [], []>} : vector<32x128xf32>, vector<128x32xf32>, vector<32x32xf32> -> vector<32x32xf32>
    %cst_28 = arith.constant dense<0.000000e+00> : vector<32x32xf32>
    %61 = tpu.matmul %0, %8, %cst_28 {dimension_numbers = #tpu.dot_dimension_numbers<[1], [0], [0], [1], [0, 0, 1, 1], [], []>} : vector<32x128xf32>, vector<128x32xf32>, vector<32x32xf32> -> vector<32x32xf32>
    %cst_29 = arith.constant dense<0.000000e+00> : vector<32x32xf32>
    %62 = tpu.matmul %0, %9, %cst_29 {dimension_numbers = #tpu.dot_dimension_numbers<[1], [0], [0], [1], [0, 0, 1, 1], [], []>} : vector<32x128xf32>, vector<128x32xf32>, vector<32x32xf32> -> vector<32x32xf32>
    %cst_30 = arith.constant dense<0.000000e+00> : vector<64x32xf32>
    %63 = tpu.matmul %4, %60, %cst_30 {dimension_numbers = #tpu.dot_dimension_numbers<[1], [0], [0], [1], [0, 0, 1, 1], [], []>} : vector<64x32xf32>, vector<32x32xf32>, vector<64x32xf32> -> vector<64x32xf32>
    %cst_31 = arith.constant dense<0.000000e+00> : vector<64x32xf32>
    %64 = tpu.matmul %5, %61, %cst_31 {dimension_numbers = #tpu.dot_dimension_numbers<[1], [0], [0], [1], [0, 0, 1, 1], [], []>} : vector<64x32xf32>, vector<32x32xf32>, vector<64x32xf32> -> vector<64x32xf32>
    %65 = arith.addf %63, %64 : vector<64x32xf32>
    %cst_32 = arith.constant dense<0.000000e+00> : vector<64x32xf32>
    %66 = tpu.matmul %6, %62, %cst_32 {dimension_numbers = #tpu.dot_dimension_numbers<[1], [0], [0], [1], [0, 0, 1, 1], [], []>} : vector<64x32xf32>, vector<32x32xf32>, vector<64x32xf32> -> vector<64x32xf32>
    %67 = arith.addf %65, %66 : vector<64x32xf32>
    %68 = vector.extract_strided_slice %67 {offsets = [0, 0], sizes = [32, 16], strides = [1, 1]} : vector<64x32xf32> to vector<32x16xf32>
    %69 = arith.negf %68 : vector<32x16xf32>
    %70 = math.exp %69 : vector<32x16xf32>
    %cst_33 = arith.constant 1.000000e+00 : f32
    %71 = vector.broadcast %cst_33 : f32 to vector<32x16xf32>
    %72 = arith.addf %71, %70 : vector<32x16xf32>
    %73 = arith.divf %71, %72 : vector<32x16xf32>
    %74 = vector.extract_strided_slice %67 {offsets = [32, 16], sizes = [32, 16], strides = [1, 1]} : vector<64x32xf32> to vector<32x16xf32>
    %75 = arith.negf %74 : vector<32x16xf32>
    %76 = math.exp %75 : vector<32x16xf32>
    %cst_34 = arith.constant 1.000000e+00 : f32
    %77 = vector.broadcast %cst_34 : f32 to vector<32x16xf32>
    %78 = arith.addf %77, %76 : vector<32x16xf32>
    %79 = arith.divf %77, %78 : vector<32x16xf32>
    %cst_35 = arith.constant dense<0.000000e+00> : vector<32x128xf32>
    %80 = tpu.matmul %73, %16, %cst_35 {dimension_numbers = #tpu.dot_dimension_numbers<[1], [0], [0], [1], [0, 0, 1, 1], [], []>} : vector<32x16xf32>, vector<16x128xf32>, vector<32x128xf32> -> vector<32x128xf32>
    %cst_36 = arith.constant dense<0.000000e+00> : vector<32x128xf32>
    %81 = tpu.matmul %79, %17, %cst_36 {dimension_numbers = #tpu.dot_dimension_numbers<[1], [0], [0], [1], [0, 0, 1, 1], [], []>} : vector<32x16xf32>, vector<16x128xf32>, vector<32x128xf32> -> vector<32x128xf32>
    %82 = arith.mulf %80, %81 : vector<32x128xf32>
    %83 = arith.mulf %0, %82 : vector<32x128xf32>
    %84 = arith.addf %0, %83 : vector<32x128xf32>
    %cst_37 = arith.constant dense<0.000000e+00> : vector<128xf32>
    %85 = vector.multi_reduction <add>, %84, %cst_37 [0] : vector<32x128xf32> to vector<128xf32>
    %86 = vector.shape_cast %85 : vector<128xf32> to vector<1x128xf32>
    %cst_38 = arith.constant 3.200000e+01 : f32
    %87 = vector.broadcast %cst_38 : f32 to vector<1x128xf32>
    %88 = arith.divf %86, %87 : vector<1x128xf32>
    %89 = vector.broadcast %88 : vector<1x128xf32> to vector<32x128xf32>
    %90 = arith.subf %84, %89 : vector<32x128xf32>
    %91 = arith.mulf %90, %90 : vector<32x128xf32>
    %cst_39 = arith.constant dense<0.000000e+00> : vector<128xf32>
    %92 = vector.multi_reduction <add>, %91, %cst_39 [0] : vector<32x128xf32> to vector<128xf32>
    %93 = vector.shape_cast %92 : vector<128xf32> to vector<1x128xf32>
    %cst_40 = arith.constant 3.200000e+01 : f32
    %94 = vector.broadcast %cst_40 : f32 to vector<1x128xf32>
    %95 = arith.divf %93, %94 : vector<1x128xf32>
    %96 = vector.broadcast %88 : vector<1x128xf32> to vector<32x128xf32>
    %97 = arith.subf %84, %96 : vector<32x128xf32>
    %cst_41 = arith.constant 9.99999974E-6 : f32
    %98 = vector.broadcast %cst_41 : f32 to vector<1x128xf32>
    %99 = arith.addf %95, %98 : vector<1x128xf32>
    %100 = math.rsqrt %99 : vector<1x128xf32>
    %101 = vector.broadcast %100 : vector<1x128xf32> to vector<32x128xf32>
    %102 = arith.mulf %97, %101 : vector<32x128xf32>
    %103 = vector.broadcast %14 : vector<32x1xf32> to vector<32x128xf32>
    %104 = arith.mulf %102, %103 : vector<32x128xf32>
    %105 = vector.broadcast %15 : vector<32x1xf32> to vector<32x128xf32>
    %106 = arith.addf %104, %105 : vector<32x128xf32>
    %107 = arith.addf %59, %106 : vector<32x128xf32>
    %c0_42 = arith.constant 0 : index
    %c0_43 = arith.constant 0 : index
    %108 = vector.load %arg3[%c0_42, %c0_43] : memref<32x128xf32, #tpu.memory_space<vmem>>, vector<32x128xf32>
    tpu.vector_store %arg3[%c0_42, %c0_43], %107 {strides = array<i32>} : memref<32x128xf32, #tpu.memory_space<vmem>>, vector<32x128xf32>,
    return
  }
}

</mosaic_0001>

<bundles_post_ra>
// kernel: tpu_custom_call.1
= control target key start
LH: loop header
LB: loop body
LE: loop exit
PB: predicated region body
PF: predicated region fallthrough
CT: control target
= control target key end

     0   :  { %s2219_s16 = smov 1   ;;  %v2220_v4 = vmov 0.0|0.0   ;;  %vm2221_vm0 = vmmov 0   ;;  %v2222_v6 = vmov 0.0   ;;  %s2661_s0 = inlined_call_operand.vmem [shape: f32[32,128], index: 0, kind: input, shape index: {}]   ;;  %s2662_s1 = inlined_call_operand.vmem [shape: f32[632,32], index: 1, kind: input, shape index: {}]   ;;  %s2663_s2 = inlined_call_operand.vmem [shape: f32[40,128], index: 2, kind: input, shape index: {}]   ;;  %s2664_s3 = inlined_call_operand.hbm [shape: f32[32,128], index: 3, kind: output, shape index: {}]  }
   0x1   :  { %v2255_v0 = vld [vmem:[%s2661_s0 + $0x10] sm:$0xff]  ;;  %v2260_v1 = vld [vmem:[%s2661_s0] sm:$0xff]  ;;  %v2267_v2 = vld [vmem:[%s2661_s0 + $0x8] sm:$0xff]  ;;  %1964 = vmatprep.subr.bf16.mxu0 %v2220_v4  ;;  %1737 = vmatprep.mubr.msk.f32.mxu0 %vm2221_vm0, %v2222_v6 }
   0x2   :  { %108 = vrot.lane.b32.xlu1 %v2255_v0, %s2219_s16  ;;  %104 = vrot.lane.b32.xlu0 %v2260_v1, %s2219_s16  ;;  %v2272_v3 = vld [vmem:[%s2661_s0 + $0x18] sm:$0xff]  ;;  %v1965_v5 = vpack.c.bf16 %v2267_v2, %v2260_v1 }
   0x3   :  { %8 = vsyncpa [#allocation3], 0  ;;  %v1968_v7 = vpack.c.bf16 %v2272_v3, %v2255_v0  ;;  %v20_v8 = vld [vmem:[%s2662_s1 + $0x8] sm:$0xff]  ;;  %vm136_vm1 = vcmask 261120   ;;  %s2223_s22 = smov 127   ;;  %v19_v30 = vld [vmem:[%s2662_s1] sm:$0xff] }
   0x4   :  { %1966 = vmatpush3.bf16.msra.mxu0 %v1965_v5  ;;  %v1551_v11 = vld [vmem:[%s2663_s2 + $0x20] ss:$0 sm:$0xff]  ;;  %v1552_v16 = vld [vmem:[%s2663_s2 + $0x21] ss:$0 sm:$0xff]  ;;  %v21_v32 = vld [vmem:[%s2662_s1 + $0x10] sm:$0xff]  ;;  %vm363_vm2 = vcmask 64512  }
   0x5   :  { %1967 = vmatprep.subr.bf16.mxu0 %v2220_v4  ;;  %v62_v33 = vld [vmem:[%s2662_s1 + $0x158] sm:$0xff]  ;;  %v63_v34 = vld [vmem:[%s2662_s1 + $0x160] sm:$0xff]  ;;  %v64_v35 = vld [vmem:[%s2662_s1 + $0x168] sm:$0xff]  ;;  %vm1238_vm3 = vcmask 130048  }
   0x6   :  { %110 = vrot.lane.b32.xlu1 %v2272_v3, %s2219_s16  ;;  %106 = vrot.lane.b32.xlu0 %v2267_v2, %s2219_s16  ;;  %v2014_v36 = vpack.c.bf16 %v63_v34, %v62_v33  ;;  %v65_v37 = vld [vmem:[%s2662_s1 + $0x170] sm:$0xff]  ;;  %v66_v39 = vld [vmem:[%s2662_s1 + $0x178] sm:$0xff] }
   0x7   :  { %v2018_v38 = vpack.c.bf16 %v65_v37, %v64_v35  ;;  %v2324_v40 = vld [vmem:[%s2662_s1 + $0x258] sm:$0xff]  ;;  %v67_v41 = vld [vmem:[%s2662_s1 + $0x180] sm:$0xff]  ;;  %v68_v43 = vld [vmem:[%s2662_s1 + $0x188] sm:$0xff] }
   0x8   :  { %1969 = vmatpush3.bf16.msra.mxu0 %v1968_v7  ;;  %1764 = vmatprep.mubr.msk.f32.mxu1 %vm363_vm2, %v2324_v40  ;;  %v2022_v42 = vpack.c.bf16 %v67_v41, %v66_v39  ;;  %v69_v44 = vld [vmem:[%s2662_s1 + $0x190] sm:$0xff]  ;;  %v70_v46 = vld [vmem:[%s2662_s1 + $0x198] sm:$0xff]  ;;  %v71_v47 = vld [vmem:[%s2662_s1 + $0x1a0] sm:$0xff] }
   0x9   :  { %1970 = vmatprep.subr.bf16.mxu0 %v2220_v4  ;;  %v2026_v45 = vpack.c.bf16 %v69_v44, %v68_v43  ;;  %v2030_v48 = vpack.c.bf16 %v71_v47, %v70_v46  ;;  %v72_v49 = vld [vmem:[%s2662_s1 + $0x1a8] sm:$0xff]  ;;  %v73_v50 = vld [vmem:[%s2662_s1 + $0x1b0] sm:$0xff]  ;;  %v74_v52 = vld [vmem:[%s2662_s1 + $0x1b8] sm:$0xff] }
   0xa   :  { %122 = vrot.lane.b32.xlu1 %v2267_v2, %s2223_s22  ;;  %120 = vrot.lane.b32.xlu0 %v2260_v1, %s2223_s22  ;;  %v2034_v51 = vpack.c.bf16 %v73_v50, %v72_v49  ;;  %v75_v53 = vld [vmem:[%s2662_s1 + $0x1c0] sm:$0xff]  ;;  %v76_v55 = vld [vmem:[%s2662_s1 + $0x1c8] sm:$0xff] }
   0xb   :  { %1738 = vmatmul.mubr.msk.f32.vlgmr.msra.gmra.mrb[0].mxu0 %vm136_vm1, %v20_v8  ;;  %v2038_v54 = vpack.c.bf16 %v75_v53, %v74_v52  ;;  %v77_v56 = vld [vmem:[%s2662_s1 + $0x1d0] sm:$0xff]  ;;  %v46_v63 = vld [vmem:[%s2662_s1 + $0xd8] sm:$0xff]  ;;  %v48_v5 = vld [vmem:[%s2662_s1 + $0xe8] sm:$0xff] }
   0xc   :  { %1748 = vmatprep.mubr.msk.f32.mxu0 %vm2221_vm0, %v2222_v6  ;;  %v2042_v57 = vpack.c.bf16 %v77_v56, %v76_v55  ;;  %v80_v34 = vld [vmem:[%s2662_s1 + $0x1e8] sm:$0xff]  ;;  %v81_v35 = vld [vmem:[%s2662_s1 + $0x1f0] sm:$0xff]  ;;  %v82_v37 = vld [vmem:[%s2662_s1 + $0x1f8] sm:$0xff] }
   0xd   :  { %v84_v41 = vld [vmem:[%s2662_s1 + $0x208] sm:$0xff]  ;;  %v86_v44 = vld [vmem:[%s2662_s1 + $0x218] sm:$0xff] }
   0xe   :  { %126 = vrot.lane.b32.xlu1 %v2272_v3, %s2223_s22  ;;  %124 = vrot.lane.b32.xlu0 %v2255_v0, %s2223_s22  ;;  %v88_v47 = vld [vmem:[%s2662_s1 + $0x228] sm:$0xff]  ;;  %v90_v50 = vld [vmem:[%s2662_s1 + $0x238] sm:$0xff]  ;;  %s2229_s22 = smov [#allocation2]  }
   0xf   :  { %v92_v53 = vld [vmem:[%s2662_s1 + $0x248] sm:$0xff]  ;;  %s1540_s23 = sshll.u32 %s2229_s22, 4  ;;  %s1541_s23 = int_to_ptr.vmem [resolvable:$true] %s1540_s23 }
  0x10   :  { %s2195_s24 = scalar_lea.vmem %s1541_s23, 512  ;;  %p2200_p1 = scmp.lt.s32.totalorder %s1541_s23, %s1541_s23 }
  0x11   :  { %p2196_p0 = scmp.ne.s32.totalorder %s1541_s23, %s2195_s24  ;;  %p2201_p2 = scmp.lt.s32.totalorder %s2195_s24, %s2195_s24 }
  0x13   :  { %p2202_p3 = por %p2201_p2, %p2200_p1 }
  0x15   :  { %p2203_p4 = pnand %p2202_p3, %p2196_p0 }
  0x74   :  { %v109_v9 = vpop.permute.xlu1 %108  ;;  %v105_v10 = vpop.permute.xlu0 %104 }
  0x75   :  { %v116_v14 = vmul.f32 %v1551_v11, %v105_v10  ;;  %v118_v17 = vmul.f32 %v1551_v11, %v109_v9  ;;  %v2379_v9 = vld [vmem:[%s2662_s1 + $0x260] sm:$0xff]  ;;  %v2384_v10 = vld [vmem:[%s2662_s1 + $0x268] sm:$0xff] }
  0x78   :  { %v111_v12 = vpop.permute.xlu1 %110  ;;  %v107_v13 = vpop.permute.xlu0 %106 }
  0x79   :  { %v117_v15 = vmul.f32 %v1551_v11, %v107_v13  ;;  %v119_v18 = vmul.f32 %v1551_v11, %v111_v12  ;;  %v50_v12 = vld [vmem:[%s2662_s1 + $0xf8] sm:$0xff]  ;;  %v51_v13 = vld [vmem:[%s2662_s1 + $0x100] sm:$0xff] }
  0x7b   :  { %v1971_v19 = vpack.c.bf16 %v117_v15, %v116_v14  ;;  %v1974_v24 = vpack.c.bf16 %v119_v18, %v118_v17  ;;  %v2399_v14 = vld [vmem:[%s2662_s1 + $0x270] sm:$0xff]  ;;  %v1990_v15 = vpack.c.bf16 %v51_v13, %v50_v12  ;;  %v22_v12 = vld [vmem:[%s2662_s1 + $0x18] sm:$0xff]  ;;  %v40_v13 = vld [vmem:[%s2662_s1 + $0xa8] sm:$0xff] }
  0x7c   :  { %v123_v20 = vpop.permute.xlu1 %122  ;;  %v121_v21 = vpop.permute.xlu0 %120  ;;  %v53_v17 = vld [vmem:[%s2662_s1 + $0x110] sm:$0xff] }
  0x7d   :  { %1972 = vmatpush3.bf16.msra.mxu0 %v1971_v19  ;;  %v133_v22 = vmul.f32 %v1552_v16, %v123_v20  ;;  %v132_v23 = vmul.f32 %v1552_v16, %v121_v21  ;;  %v54_v19 = vld [vmem:[%s2662_s1 + $0x118] sm:$0xff]  ;;  %v55_v20 = vld [vmem:[%s2662_s1 + $0x120] sm:$0xff] }
  0x7e   :  { %1973 = vmatprep.subr.bf16.mxu0 %v2220_v4  ;;  %v1998_v21 = vpack.c.bf16 %v55_v20, %v54_v19 }
  0x7f   :  { %v1977_v27 = vpack.c.bf16 %v133_v22, %v132_v23  ;;  %v56_v22 = vld [vmem:[%s2662_s1 + $0x128] sm:$0xff]  ;;  %v57_v23 = vld [vmem:[%s2662_s1 + $0x130] sm:$0xff] }
  0x80   :  { %v127_v25 = vpop.permute.xlu1 %126  ;;  %v125_v26 = vpop.permute.xlu0 %124 }
  0x81   :  { %1975 = vmatpush3.bf16.msra.mxu0 %v1974_v24  ;;  %v135_v28 = vmul.f32 %v1552_v16, %v127_v25  ;;  %v134_v29 = vmul.f32 %v1552_v16, %v125_v26  ;;  %v52_v16 = vld [vmem:[%s2662_s1 + $0x108] sm:$0xff]  ;;  %v2002_v24 = vpack.c.bf16 %v57_v23, %v56_v22  ;;  %v58_v25 = vld [vmem:[%s2662_s1 + $0x138] sm:$0xff]  ;;  %v59_v26 = vld [vmem:[%s2662_s1 + $0x140] sm:$0xff] }
  0x82   :  { %1976 = vmatprep.subr.bf16.mxu0 %v2220_v4  ;;  %v1994_v18 = vpack.c.bf16 %v53_v17, %v52_v16 }
  0x83   :  { %v1980_v31 = vpack.c.bf16 %v135_v28, %v134_v29  ;;  %v60_v28 = vld [vmem:[%s2662_s1 + $0x148] sm:$0xff]  ;;  %v61_v29 = vld [vmem:[%s2662_s1 + $0x150] sm:$0xff] }
  0x84   :  { %1749 = vmatmul.mubr.msk.f32.vlgmr.msra.gmra.mrb[0].mxu0 %vm136_vm1, %v19_v30  ;;  %v2010_v30 = vpack.c.bf16 %v61_v29, %v60_v28 }
  0x85   :  { %1978 = vmatpush3.bf16.msra.mxu0 %v1977_v27  ;;  %1759 = vmatprep.mubr.msk.f32.mxu0 %vm2221_vm0, %v2222_v6  ;;  %v49_v6 = vld [vmem:[%s2662_s1 + $0xf0] sm:$0xff]  ;;  %v2006_v27 = vpack.c.bf16 %v59_v26, %v58_v25 }
  0x86   :  { %1979 = vmatprep.subr.bf16.mxu0 %v2220_v4  ;;  %v47_v4 = vld [vmem:[%s2662_s1 + $0xe0] sm:$0xff]  ;;  %v1986_v11 = vpack.c.bf16 %v49_v6, %v48_v5  ;;  %v33_v5 = vld [vmem:[%s2662_s1 + $0x70] sm:$0xff]  ;;  %v34_v6 = vld [vmem:[%s2662_s1 + $0x78] sm:$0xff] }
  0x87   :  { %v1982_v7 = vpack.c.bf16 %v47_v4, %v46_v63  ;;  %v31_v63 = vld [vmem:[%s2662_s1 + $0x60] sm:$0xff]  ;;  %v32_v4 = vld [vmem:[%s2662_s1 + $0x68] sm:$0xff] }
  0x89   :  { %1981 = vmatpush3.bf16.msra.mxu0 %v1980_v31  ;;  %v78_v31 = vld [vmem:[%s2662_s1 + $0x1d8] sm:$0xff] }
  0x8a   :  { %2015 = vmatprep.subr.bf16.mxu0 %v2014_v36 }
  0x8c   :  { %1760 = vmatmul.mubr.msk.f32.vlgmr.msra.gmra.mrb[0].mxu0 %vm136_vm1, %v21_v32  ;;  %v79_v32 = vld [vmem:[%s2662_s1 + $0x1e0] sm:$0xff] }
  0x8d   :  { %1840 = vmatprep.mubr.f32.mxu0 %v2260_v1  ;;  %2017 = vmatpush3.bf16.msra.mxu0 %v2014_v36  ;;  %v2046_v33 = vpack.c.bf16 %v79_v32, %v78_v31  ;;  %v2050_v36 = vpack.c.bf16 %v81_v35, %v80_v34 }
  0x8e   :  { %2019 = vmatprep.subr.bf16.mxu0 %v2018_v38 }
  0x91   :  { %2021 = vmatpush3.bf16.msra.mxu0 %v2018_v38  ;;  %v83_v38 = vld [vmem:[%s2662_s1 + $0x200] sm:$0xff] }
  0x92   :  { %2023 = vmatprep.subr.bf16.mxu0 %v2022_v42  ;;  %v2054_v39 = vpack.c.bf16 %v83_v38, %v82_v37 }
  0x95   :  { %2025 = vmatpush3.bf16.msra.mxu0 %v2022_v42  ;;  %v85_v42 = vld [vmem:[%s2662_s1 + $0x210] sm:$0xff] }
  0x96   :  { %2027 = vmatprep.subr.bf16.mxu0 %v2026_v45  ;;  %v2058_v43 = vpack.c.bf16 %v85_v42, %v84_v41 }
  0x99   :  { %2029 = vmatpush3.bf16.msra.mxu0 %v2026_v45  ;;  %v87_v45 = vld [vmem:[%s2662_s1 + $0x220] sm:$0xff] }
  0x9a   :  { %2031 = vmatprep.subr.bf16.mxu0 %v2030_v48  ;;  %v2062_v46 = vpack.c.bf16 %v87_v45, %v86_v44 }
  0x9d   :  { %2033 = vmatpush3.bf16.msra.mxu0 %v2030_v48  ;;  %v89_v48 = vld [vmem:[%s2662_s1 + $0x230] sm:$0xff] }
  0x9e   :  { %2035 = vmatprep.subr.bf16.mxu0 %v2034_v51  ;;  %v2066_v49 = vpack.c.bf16 %v89_v48, %v88_v47 }
  0xa1   :  { %2037 = vmatpush3.bf16.msra.mxu0 %v2034_v51  ;;  %v91_v51 = vld [vmem:[%s2662_s1 + $0x240] sm:$0xff] }
  0xa2   :  { %2039 = vmatprep.subr.bf16.mxu0 %v2038_v54  ;;  %v2070_v52 = vpack.c.bf16 %v91_v51, %v90_v50 }
  0xa5   :  { %2041 = vmatpush3.bf16.msra.mxu0 %v2038_v54  ;;  %v93_v54 = vld [vmem:[%s2662_s1 + $0x250] sm:$0xff] }
  0xa6   :  { %2043 = vmatprep.subr.bf16.mxu0 %v2042_v57  ;;  %v2074_v55 = vpack.c.bf16 %v93_v54, %v92_v53  ;;  %v23_v54 = vld [vmem:[%s2662_s1 + $0x20] sm:$0xff] }
  0xa9   :  { %2045 = vmatpush3.bf16.msra.mxu0 %v2042_v57 }
  0xac   :  { %1841 = vmatmul.mubr.f32.vlgmr.msra.gmra.mrb[2].mxu0 %v2267_v2 }
  0xad   :  { %1843 = vmatprep.mubr.f32.mxu0 %v2255_v0 }
  0xb0   :  { %1844 = vmatmul.mubr.f32.gmra.mrb[4].mxu0 %v2272_v3 }
 0x15f   :  { %v352_v58 = vpop.f32.mrb[0].mxu0 }
 0x160   :  { %v1556_v59 = vmul.f32 -1.442695, %v352_v58  ;;  %v1761_v60 = vpop.f32.mrb[1].mxu0 }
 0x162   :  { %2155 = vpow2.f32 %v1556_v59 }
 0x16c   :  { %v2156_v61 = vpop.eup %2155 }
 0x16d   :  { %v360_v62 = vadd.f32 1.0, %v2156_v61 }
 0x16f   :  { %2157 = vrcp.f32 %v360_v62  ;;  %v30_v62 = vld [vmem:[%s2662_s1 + $0x58] sm:$0xff] }
 0x170   :  { %1892 = vmatprep.mubr.msk.f32.mxu0 %vm136_vm1, %v30_v62  ;;  %v27_v62 = vld [vmem:[%s2662_s1 + $0x40] sm:$0xff] }
 0x179   :  { %v2158_v8 = vpop.eup %2157 }
 0x17a   :  { %1762 = vmatprep.subr.mxu1 %v2158_v8 }
 0x17b   :  { %1763 = vmatpush3.msra.mxu1 %v2158_v8  ;;  %v36_v8 = vld [vmem:[%s2662_s1 + $0x88] sm:$0xff] }
 0x17c   :  { %1765 = vmatmul.mubr.msk.f32.vlgmr.msra.gmra.mrb[0].mxu1 %vm363_vm2, %v2379_v9  ;;  %1983 = vmatprep.subr.bf16.mxu1 %v1982_v7 }
 0x17d   :  { %1985 = vmatpush3.bf16.msra.mxu1 %v1982_v7  ;;  %1767 = vmatprep.mubr.msk.f32.mxu1 %vm363_vm2, %v2384_v10  ;;  %v35_v7 = vld [vmem:[%s2662_s1 + $0x80] sm:$0xff] }
 0x17e   :  { %1987 = vmatprep.subr.bf16.mxu1 %v1986_v11 }
 0x17f   :  { %v1842_v56 = vpop.f32.mrb[2].mxu0 }
 0x180   :  { %1768 = vmatmul.mubr.msk.f32.gmra.mrb[2].mxu1 %vm363_vm2, %v2399_v14  ;;  %v691_v57 = vpop.f32.mrb[3].mxu0 }
 0x181   :  { %1989 = vmatpush3.bf16.msra.mxu1 %v1986_v11  ;;  %1802 = vmatprep.mubr.f32.mxu1 %v2260_v1  ;;  %v2078_v58 = vpack.c.bf16 %v1842_v56, %v691_v57  ;;  %v37_v11 = vld [vmem:[%s2662_s1 + $0x90] sm:$0xff] }
 0x182   :  { %1991 = vmatprep.subr.bf16.mxu1 %v1990_v15 }
 0x183   :  { %v1845_v59 = vpop.f32.mrb[4].mxu0  ;;  %2079 = vmatprep.subr.bf16.mxu0 %v2078_v58 }
 0x184   :  { %v701_v60 = vpop.f32.mrb[5].mxu0  ;;  %2081 = vmatpush3.bf16.msra.mxu0 %v2078_v58  ;;  %v25_v58 = vld [vmem:[%s2662_s1 + $0x30] sm:$0xff] }
 0x185   :  { %1993 = vmatpush3.bf16.msra.mxu1 %v1990_v15  ;;  %v2082_v61 = vpack.c.bf16 %v1845_v59, %v701_v60  ;;  %v26_v59 = vld [vmem:[%s2662_s1 + $0x38] sm:$0xff] }
 0x186   :  { %1995 = vmatprep.subr.bf16.mxu1 %v1994_v18 }
 0x187   :  { %2083 = vmatprep.subr.bf16.mxu0 %v2082_v61 }
 0x188   :  { %2085 = vmatpush3.bf16.msra.mxu0 %v2082_v61 }
 0x189   :  { %1997 = vmatpush3.bf16.msra.mxu1 %v1994_v18 }
 0x18a   :  { %1999 = vmatprep.subr.bf16.mxu1 %v1998_v21 }
 0x18b   :  { %1893 = vmatmul.mubr.msk.f32.vlgmr.msra.gmra.mrb[6].mxu0 %vm136_vm1, %v31_v63  ;;  %v28_v63 = vld [vmem:[%s2662_s1 + $0x48] sm:$0xff] }
 0x18c   :  { %1895 = vmatprep.mubr.msk.f32.mxu0 %vm136_vm1, %v32_v4 }
 0x18d   :  { %2001 = vmatpush3.bf16.msra.mxu1 %v1998_v21 }
 0x18e   :  { %2003 = vmatprep.subr.bf16.mxu1 %v2002_v24 }
 0x18f   :  { %1896 = vmatmul.mubr.msk.f32.gmra.mrb[8].mxu0 %vm136_vm1, %v33_v5  ;;  %v29_v5 = vld [vmem:[%s2662_s1 + $0x50] sm:$0xff] }
 0x190   :  { %1898 = vmatprep.mubr.msk.f32.mxu0 %vm136_vm1, %v34_v6  ;;  %v38_v6 = vld [vmem:[%s2662_s1 + $0x98] sm:$0xff] }
 0x191   :  { %2005 = vmatpush3.bf16.msra.mxu1 %v2002_v24 }
 0x192   :  { %2007 = vmatprep.subr.bf16.mxu1 %v2006_v27 }
 0x193   :  { %1899 = vmatmul.mubr.msk.f32.gmra.mrb[10].mxu0 %vm136_vm1, %v35_v7 }
 0x194   :  { %1901 = vmatprep.mubr.msk.f32.mxu0 %vm136_vm1, %v36_v8 }
 0x195   :  { %2009 = vmatpush3.bf16.msra.mxu1 %v2006_v27 }
 0x196   :  { %2011 = vmatprep.subr.bf16.mxu1 %v2010_v30 }
 0x197   :  { %1902 = vmatmul.mubr.msk.f32.gmra.mrb[12].mxu0 %vm136_vm1, %v37_v11 }
 0x198   :  { %1912 = vmatprep.mubr.msk.f32.mxu0 %vm136_vm1, %v22_v12 }
 0x199   :  { %2013 = vmatpush3.bf16.msra.mxu1 %v2010_v30 }
 0x19a   :  { %2047 = vmatprep.subr.bf16.mxu1 %v2046_v33 }
 0x19c   :  { %1803 = vmatmul.mubr.f32.vlgmr.msra.gmra.mrb[4].mxu1 %v2267_v2 }
 0x19d   :  { %2049 = vmatpush3.bf16.msra.mxu1 %v2046_v33  ;;  %1805 = vmatprep.mubr.f32.mxu1 %v2255_v0 }
 0x19e   :  { %2051 = vmatprep.subr.bf16.mxu1 %v2050_v36 }
 0x1a0   :  { %1806 = vmatmul.mubr.f32.gmra.mrb[6].mxu1 %v2272_v3 }
 0x1a1   :  { %2053 = vmatpush3.bf16.msra.mxu1 %v2050_v36  ;;  %1878 = vmatprep.mubr.f32.mxu1 %v2260_v1 }
 0x1a2   :  { %2055 = vmatprep.subr.bf16.mxu1 %v2054_v39 }
 0x1a5   :  { %2057 = vmatpush3.bf16.msra.mxu1 %v2054_v39 }
 0x1a6   :  { %2059 = vmatprep.subr.bf16.mxu1 %v2058_v43 }
 0x1a9   :  { %2061 = vmatpush3.bf16.msra.mxu1 %v2058_v43 }
 0x1aa   :  { %2063 = vmatprep.subr.bf16.mxu1 %v2062_v46 }
 0x1ad   :  { %2065 = vmatpush3.bf16.msra.mxu1 %v2062_v46 }
 0x1ae   :  { %2067 = vmatprep.subr.bf16.mxu1 %v2066_v49 }
 0x1b1   :  { %2069 = vmatpush3.bf16.msra.mxu1 %v2066_v49 }
 0x1b2   :  { %2071 = vmatprep.subr.bf16.mxu1 %v2070_v52 }
 0x1b5   :  { %2073 = vmatpush3.bf16.msra.mxu1 %v2070_v52 }
 0x1b6   :  { %2075 = vmatprep.subr.bf16.mxu1 %v2074_v55 }
 0x1b9   :  { %2077 = vmatpush3.bf16.msra.mxu1 %v2074_v55  ;;  %v24_v55 = vld [vmem:[%s2662_s1 + $0x28] sm:$0xff] }
 0x1bc   :  { %1879 = vmatmul.mubr.f32.vlgmr.msra.gmra.mrb[8].mxu1 %v2267_v2 }
 0x1bd   :  { %1881 = vmatprep.mubr.f32.mxu1 %v2255_v0 }
 0x1c0   :  { %1882 = vmatmul.mubr.f32.gmra.mrb[10].mxu1 %v2272_v3 }
 0x1c1   :  { %1935 = vmatprep.mubr.msk.f32.mxu1 %vm136_vm1, %v40_v13 }
 0x24f   :  { %v1766_v15 = vpop.f32.mrb[0].mxu1 }
 0x250   :  { %v462_v16 = vadd.f32 %v1766_v15, %v2267_v2  ;;  %v442_v17 = vpop.f32.mrb[1].mxu1 }
 0x251   :  { %v461_v18 = vadd.f32 %v442_v17, %v2260_v1 }
 0x253   :  { %v465_v19 = vadd.f32 %v462_v16, %v461_v18  ;;  %v1769_v20 = vpop.f32.mrb[2].mxu1 }
 0x254   :  { %v452_v21 = vpop.f32.mrb[3].mxu1  ;;  %v464_v22 = vadd.f32 %v1769_v20, %v2272_v3 }
 0x255   :  { %v463_v23 = vadd.f32 %v452_v21, %v2255_v0  ;;  %v39_v21 = vld [vmem:[%s2662_s1 + $0xa0] sm:$0xff] }
 0x257   :  { %v466_v24 = vadd.f32 %v465_v19, %v463_v23 }
 0x259   :  { %v467_v25 = vadd.f32 %v466_v24, %v464_v22  ;;  %v43_v24 = vld [vmem:[%s2662_s1 + $0xc0] sm:$0xff] }
 0x25b   :  { %v468_v26 = vrot.slane %v467_v25, 4 }
 0x25d   :  { %v469_v27 = vadd.f32 %v468_v26, %v467_v25  ;;  %v44_v25 = vld [vmem:[%s2662_s1 + $0xc8] sm:$0xff]  ;;  %v45_v26 = vld [vmem:[%s2662_s1 + $0xd0] sm:$0xff] }
 0x25f   :  { %v470_v28 = vrot.slane %v469_v27, 2 }
 0x261   :  { %v471_v29 = vadd.f32 %v470_v28, %v469_v27  ;;  %v98_v27 = vld [vmem:[%s2663_s2] sm:$0xff]  ;;  %v99_v28 = vld [vmem:[%s2663_s2 + $0x8] sm:$0xff] }
 0x263   :  { %v472_v30 = vrot.slane %v471_v29, 1 }
 0x265   :  { %v473_v31 = vadd.f32 %v472_v30, %v471_v29  ;;  %v2102_v29 = vpack.c.bf16 %v99_v28, %v98_v27  ;;  %v2224_v30 = vmov 8  }
 0x266   :  { %2148 = vset.pattern.permute.xlu1 %v2224_v30  ;;  %2147 = vset.pattern.permute.xlu0 %v2224_v30 }
 0x267   :  { %v475_v32 = vmul.f32 0.03125, %v473_v31  ;;  %v100_v31 = vld [vmem:[%s2663_s2 + $0x10] sm:$0xff] }
 0x269   :  { %v478_v33 = vsub.f32 %v463_v23, %v475_v32  ;;  %v479_v34 = vsub.f32 %v464_v22, %v475_v32  ;;  %v476_v35 = vsub.f32 %v461_v18, %v475_v32  ;;  %v477_v36 = vsub.f32 %v462_v16, %v475_v32  ;;  %v41_v22 = vld [vmem:[%s2662_s1 + $0xb0] sm:$0xff]  ;;  %v42_v23 = vld [vmem:[%s2662_s1 + $0xb8] sm:$0xff] }
 0x26a   :  { %v101_v32 = vld [vmem:[%s2663_s2 + $0x18] sm:$0xff]  ;;  %s2225_s2 = smov 112  }
 0x26b   :  { %v480_v37 = vmul.f32 %v476_v35, %v476_v35  ;;  %v481_v38 = vmul.f32 %v477_v36, %v477_v36  ;;  %v482_v39 = vmul.f32 %v478_v33, %v478_v33  ;;  %v483_v43 = vmul.f32 %v479_v34, %v479_v34 }
 0x26d   :  { %v484_v41 = vadd.f32 %v481_v38, %v480_v37 }
 0x26f   :  { %v1804_v42 = vpop.f32.mrb[4].mxu1  ;;  %v485_v44 = vadd.f32 %v484_v41, %v482_v39 }
 0x270   :  { %v606_v45 = vpop.f32.mrb[5].mxu1 }
 0x271   :  { %v2086_v46 = vpack.c.bf16 %v1804_v42, %v606_v45  ;;  %v486_v47 = vadd.f32 %v485_v44, %v483_v43 }
 0x273   :  { %2087 = vmatprep.subr.bf16.mxu0 %v2086_v46  ;;  %v1807_v48 = vpop.f32.mrb[6].mxu1  ;;  %v487_v49 = vrot.slane %v486_v47, 4 }
 0x274   :  { %2089 = vmatpush3.bf16.msra.mxu0 %v2086_v46  ;;  %v616_v50 = vpop.f32.mrb[7].mxu1 }
 0x275   :  { %v2090_v51 = vpack.c.bf16 %v1807_v48, %v616_v50  ;;  %v488_v52 = vadd.f32 %v487_v49, %v486_v47 }
 0x277   :  { %2091 = vmatprep.subr.bf16.mxu0 %v2090_v51  ;;  %v489_v53 = vrot.slane %v488_v52, 2 }
 0x278   :  { %2093 = vmatpush3.bf16.msra.mxu0 %v2090_v51 }
 0x279   :  { %v490_v56 = vadd.f32 %v489_v53, %v488_v52 }
 0x27b   :  { %1913 = vmatmul.mubr.msk.f32.vlgmr.msra.gmra.mrb[6].mxu0 %vm136_vm1, %v23_v54  ;;  %v491_v57 = vrot.slane %v490_v56, 1 }
 0x27c   :  { %1915 = vmatprep.mubr.msk.f32.mxu0 %vm136_vm1, %v24_v55 }
 0x27d   :  { %v492_v60 = vadd.f32 %v491_v57, %v490_v56 }
 0x27f   :  { %1916 = vmatmul.mubr.msk.f32.gmra.mrb[8].mxu0 %vm136_vm1, %v25_v58  ;;  %v493_v61 = vmul.f32 0.03125, %v492_v60 }
 0x280   :  { %1918 = vmatprep.mubr.msk.f32.mxu0 %vm136_vm1, %v26_v59 }
 0x281   :  { %v494_v4 = vadd.f32 1e-05, %v493_v61 }
 0x283   :  { %1919 = vmatmul.mubr.msk.f32.gmra.mrb[10].mxu0 %vm136_vm1, %v27_v62  ;;  %2159 = vrsqrt.f32 %v494_v4 }
 0x284   :  { %1921 = vmatprep.mubr.msk.f32.mxu0 %vm136_vm1, %v28_v63 }
 0x287   :  { %1922 = vmatmul.mubr.msk.f32.gmra.mrb[12].mxu0 %vm136_vm1, %v29_v5 }
 0x288   :  { %1932 = vmatprep.mubr.msk.f32.mxu0 %vm136_vm1, %v38_v6 }
 0x28d   :  { %v2160_v7 = vpop.eup %2159 }
 0x28e   :  { %v2565_v8 = vmul.f32 %v2160_v7, %v477_v36  ;;  %v2567_v11 = vmul.f32 %v2160_v7, %v476_v35  ;;  %v2569_v12 = vmul.f32 %v2160_v7, %v478_v33  ;;  %v2571_v13 = vmul.f32 %v2160_v7, %v479_v34 }
 0x28f   :  { %v1880_v15 = vpop.f32.mrb[8].mxu1  ;;  %v2609_v33 = vpack.c.bf16 %v101_v32, %v100_v31 }
 0x290   :  { %v776_v16 = vpop.f32.mrb[9].mxu1 }
 0x291   :  { %v2094_v17 = vpack.c.bf16 %v1880_v15, %v776_v16 }
 0x293   :  { %v1883_v18 = vpop.f32.mrb[10].mxu1  ;;  %2095 = vmatprep.subr.bf16.mxu0 %v2094_v17  ;;  %2110 = vmatprep.subr.bf16.mxu1 %v2094_v17 }
 0x294   :  { %v786_v19 = vpop.f32.mrb[11].mxu1  ;;  %2097 = vmatpush3.bf16.msra.mxu0 %v2094_v17  ;;  %2112 = vmatpush3.bf16.msra.mxu1 %v2094_v17 }
 0x295   :  { %v2098_v20 = vpack.c.bf16 %v1883_v18, %v786_v19 }
 0x297   :  { %2099 = vmatprep.subr.bf16.mxu0 %v2098_v20  ;;  %2111 = vmatprep.subr.bf16.mxu1 %v2098_v20 }
 0x298   :  { %2101 = vmatpush3.bf16.msra.mxu0 %v2098_v20  ;;  %2113 = vmatpush3.bf16.msra.mxu1 %v2098_v20 }
 0x299   :  { %2103 = vmatprep.subr.bf16.mxu1 %v2102_v29 }
 0x29b   :  { %1933 = vmatmul.mubr.msk.f32.vlgmr.msra.gmra.mrb[6].mxu0 %vm136_vm1, %v39_v21  ;;  %1936 = vmatmul.mubr.msk.f32.vlgmr.msra.gmra.mrb[12].mxu1 %vm136_vm1, %v41_v22 }
 0x29c   :  { %1938 = vmatprep.mubr.msk.f32.mxu1 %vm136_vm1, %v42_v23  ;;  %2105 = vmatpush3.bf16.msra.mxu1 %v2102_v29 }
 0x29d   :  { %2107 = vmatprep.subr.bf16.mxu1 %v2609_v33 }
 0x29f   :  { %1939 = vmatmul.mubr.msk.f32.gmra.mrb[14].mxu1 %vm136_vm1, %v43_v24 }
 0x2a0   :  { %1941 = vmatprep.mubr.msk.f32.mxu1 %vm136_vm1, %v44_v25 }
 0x2a3   :  { %1942 = vmatmul.mubr.msk.f32.gmra.mrb[16].mxu1 %vm136_vm1, %v45_v26 }
 0x352   :  { %v1917_v34 = vpop.f32.mrb[8].mxu0 }
 0x353   :  { %v1024_v35 = vpop.f32.mrb[9].mxu0 }
 0x356   :  { %v1920_v36 = vpop.f32.mrb[10].mxu0 }
 0x357   :  { %v1034_v37 = vpop.f32.mrb[11].mxu0 }
 0x35a   :  { %v1923_v38 = vpop.f32.mrb[12].mxu0 }
 0x35b   :  { %v1044_v39 = vpop.f32.mrb[13].mxu0 }
 0x36e   :  { %v1934_v41 = vpop.f32.mrb[6].mxu0  ;;  %v1937_v42 = vpop.f32.mrb[12].mxu1 }
 0x36f   :  { %v1586_v43 = vmul.f32 -1.442695, %v1934_v41  ;;  %v2114_v44 = vadd.f32 %v1937_v42, %v1917_v34  ;;  %v1143_v45 = vpop.f32.mrb[7].mxu0  ;;  %v1153_v46 = vpop.f32.mrb[13].mxu1 }
 0x370   :  { %v1585_v47 = vmul.f32 -1.442695, %v1143_v45  ;;  %v2115_v48 = vadd.f32 %v1153_v46, %v1024_v35  ;;  %v2227_v35 = vmov 9  }
 0x371   :  { %2161 = vpow2.f32 %v1586_v43  ;;  %v1588_v49 = vmul.f32 -1.442695, %v2114_v44 }
 0x372   :  { %2163 = vpow2.f32 %v1585_v47  ;;  %v1587_v50 = vmul.f32 -1.442695, %v2115_v48  ;;  %v1940_v51 = vpop.f32.mrb[14].mxu1 }
 0x373   :  { %2165 = vpow2.f32 %v1588_v49  ;;  %v2116_v52 = vadd.f32 %v1940_v51, %v1920_v36  ;;  %v1163_v53 = vpop.f32.mrb[15].mxu1  ;;  %v2228_v36 = vmov 11  }
 0x374   :  { %2167 = vpow2.f32 %v1587_v50  ;;  %v2117_v54 = vadd.f32 %v1163_v53, %v1034_v37 }
 0x375   :  { %v1590_v55 = vmul.f32 -1.442695, %v2116_v52 }
 0x376   :  { %v1589_v56 = vmul.f32 -1.442695, %v2117_v54  ;;  %v1943_v57 = vpop.f32.mrb[16].mxu1 }
 0x377   :  { %2169 = vpow2.f32 %v1590_v55  ;;  %v2118_v58 = vadd.f32 %v1943_v57, %v1923_v38  ;;  %v1173_v59 = vpop.f32.mrb[17].mxu1 }
 0x378   :  { %2171 = vpow2.f32 %v1589_v56  ;;  %v2119_v60 = vadd.f32 %v1173_v59, %v1044_v39 }
 0x379   :  { %v1592_v61 = vmul.f32 -1.442695, %v2118_v58 }
 0x37a   :  { %v1591_v62 = vmul.f32 -1.442695, %v2119_v60 }
 0x37b   :  { %v2162_v63 = vpop.eup %2161  ;;  %2173 = vpow2.f32 %v1592_v61 }
 0x37c   :  { %v2164_v4 = vpop.eup %2163  ;;  %v1203_v5 = vadd.f32 1.0, %v2162_v63  ;;  %2175 = vpow2.f32 %v1591_v62 }
 0x37d   :  { %v2166_v6 = vpop.eup %2165  ;;  %v1202_v7 = vadd.f32 1.0, %v2164_v4 }
 0x37e   :  { %v2168_v15 = vpop.eup %2167  ;;  %v1205_v16 = vadd.f32 1.0, %v2166_v6 }
 0x37f   :  { %2177 = vrcp.f32 %v1202_v7  ;;  %v1204_v17 = vadd.f32 1.0, %v2168_v15 }
 0x380   :  { %2179 = vrcp.f32 %v1203_v5 }
 0x381   :  { %v2170_v18 = vpop.eup %2169  ;;  %2181 = vrcp.f32 %v1204_v17 }
 0x382   :  { %v2172_v19 = vpop.eup %2171  ;;  %v1227_v20 = vadd.f32 1.0, %v2170_v18  ;;  %2183 = vrcp.f32 %v1205_v16 }
 0x383   :  { %v1226_v21 = vadd.f32 1.0, %v2172_v19 }
 0x384   :  { %2185 = vrcp.f32 %v1227_v20 }
 0x385   :  { %v2174_v22 = vpop.eup %2173  ;;  %2187 = vrcp.f32 %v1226_v21 }
 0x386   :  { %v2176_v23 = vpop.eup %2175  ;;  %v1229_v24 = vadd.f32 1.0, %v2174_v22 }
 0x387   :  { %v1228_v25 = vadd.f32 1.0, %v2176_v23 }
 0x388   :  { %2189 = vrcp.f32 %v1229_v24 }
 0x389   :  { %v2178_v26 = vpop.eup %2177  ;;  %2191 = vrcp.f32 %v1228_v25 }
 0x38a   :  { %v2180_v27 = vpop.eup %2179  ;;  %1948 = vmatprep.mubr.msk.f32.mxu1 %vm1238_vm3, %v2178_v26 }
 0x38b   :  { %v2182_v28 = vpop.eup %2181  ;;  %1949 = vmatmul.mubr.msk.f32.vlgmr.msra.gmra.mrb[18].mxu1 %vm1238_vm3, %v2180_v27 }
 0x38c   :  { %1951 = vmatprep.mubr.msk.f32.mxu1 %vm1238_vm3, %v2182_v28  ;;  %2109 = vmatpush3.bf16.msra.mxu1 %v2609_v33  ;;  %v2184_v29 = vpop.eup %2183  ;;  %v2226_v33 = vmov 10  }
 0x38e   :  { %v2186_v30 = vpop.eup %2185 }
 0x38f   :  { %v2188_v31 = vpop.eup %2187  ;;  %1342 = vrot.lane.b32.xlu1 %v2186_v30, %s2225_s2  ;;  %1952 = vmatmul.mubr.msk.f32.gmra.mrb[20].mxu1 %vm1238_vm3, %v2184_v29 }
 0x390   :  { %1340 = vrot.lane.b32.xlu0 %v2188_v31, %s2225_s2 }
 0x392   :  { %v2190_v32 = vpop.eup %2189 }
 0x393   :  { %v2192_v34 = vpop.eup %2191  ;;  %1346 = vrot.lane.b32.xlu1 %v2190_v32, %s2225_s2 }
 0x394   :  { %1344 = vrot.lane.b32.xlu0 %v2192_v34, %s2225_s2 }
 0x397   :  { %505 = vperm.xlu1 %2148, %v2379_v9  }
 0x398   :  { %501 = vperm.xlu0 %2147, %v2324_v40  }
 0x39b   :  { %509 = vperm.xlu1 %2148, %v2384_v10  }
 0x39c   :  { %513 = vperm.xlu0 %2147, %v2399_v14  }
 0x39f   :  { %2149 = vset.pattern.permute.xlu1 %v2226_v33 }
 0x3a0   :  { %1488 = vperm.xlu1 %2149, %v2324_v40   ;;  %2150 = vset.pattern.permute.xlu0 %v2226_v33 }
 0x3a1   :  { %1492 = vperm.xlu0 %2150, %v2379_v9  }
 0x3a4   :  { %1496 = vperm.xlu1 %2149, %v2384_v10  }
 0x3a5   :  { %2151 = vset.pattern.permute.xlu0 %v2227_v35 }
 0x3a6   :  { %521 = vperm.xlu0 %2151, %v2324_v40  }
 0x3a8   :  { %1500 = vperm.xlu1 %2149, %v2399_v14  }
 0x3aa   :  { %533 = vperm.xlu0 %2151, %v2399_v14  }
 0x3ac   :  { %2152 = vset.pattern.permute.xlu1 %v2227_v35 }
 0x3ad   :  { %525 = vperm.xlu1 %2152, %v2379_v9  }
 0x3ae   :  { %2154 = vset.pattern.permute.xlu0 %v2228_v36 }
 0x3af   :  { %1512 = vperm.xlu0 %2154, %v2379_v9  }
 0x3b1   :  { %529 = vperm.xlu1 %2152, %v2384_v10  }
 0x3b5   :  { %2153 = vset.pattern.permute.xlu1 %v2228_v36 }
 0x3b6   :  { %1508 = vperm.xlu1 %2153, %v2324_v40  }
 0x3ba   :  { %1516 = vperm.xlu1 %2153, %v2384_v10  }
 0x3be   :  { %1520 = vperm.xlu1 %2153, %v2399_v14  }
 0x401   :  { %v1343_v37 = vpop.permute.xlu1 %1342 }
 0x402   :  { %v1341_v38 = vpop.permute.xlu0 %1340 }
 0x403   :  { %1958 = vmatprep.mubr.msk.f32.mxu1 %vm1238_vm3, %v1341_v38 }
 0x404   :  { %1959 = vmatmul.mubr.msk.f32.vlgmr.msra.gmra.mrb[22].mxu1 %vm1238_vm3, %v1343_v37 }
 0x405   :  { %v1347_v41 = vpop.permute.xlu1 %1346 }
 0x406   :  { %v1345_v39 = vpop.permute.xlu0 %1344 }
 0x407   :  { %1961 = vmatprep.mubr.msk.f32.mxu1 %vm1238_vm3, %v1345_v39 }
 0x408   :  { %1962 = vmatmul.mubr.msk.f32.gmra.mrb[24].mxu1 %vm1238_vm3, %v1347_v41 }
 0x416   :  { %v506_v63 = vpop.permute.xlu1 %505 }
 0x417   :  { %v502_v27 = vpop.permute.xlu0 %501 }
 0x41a   :  { %v510_v6 = vpop.permute.xlu1 %509 }
 0x41b   :  { %v514_v32 = vpop.permute.xlu0 %513 }
 0x41f   :  { %v1489_v15 = vpop.permute.xlu1 %1488 }
 0x420   :  { %v1493_v36 = vpop.permute.xlu0 %1492 }
 0x423   :  { %v1497_v22 = vpop.permute.xlu1 %1496 }
 0x425   :  { %v522_v41 = vpop.permute.xlu0 %521 }
 0x427   :  { %v1501_v28 = vpop.permute.xlu1 %1500 }
 0x42c   :  { %v526_v34 = vpop.permute.xlu1 %525 }
 0x430   :  { %v530_v38 = vpop.permute.xlu1 %529 }
 0x45e   :  { %v1950_v42 = vpop.f32.mrb[18].mxu1 }
 0x45f   :  { %v1317_v40 = vpop.f32.mrb[19].mxu1 }
 0x462   :  { %v1953_v43 = vpop.f32.mrb[20].mxu1 }
 0x463   :  { %v1327_v9 = vpop.f32.mrb[21].mxu1 }
 0x4d7   :  { %v1960_v44 = vpop.f32.mrb[22].mxu1 }
 0x4d8   :  { %v1442_v10 = vmul.f32 %v1960_v44, %v1950_v42  ;;  %v1422_v45 = vpop.f32.mrb[23].mxu1  ;;  %v1509_v42 = vpop.permute.xlu1 %1508 }
 0x4d9   :  { %v1441_v14 = vmul.f32 %v1422_v45, %v1317_v40  ;;  %v534_v40 = vpop.permute.xlu0 %533 }
 0x4da   :  { %v1446_v46 = vmul.f32 %v1442_v10, %v2267_v2 }
 0x4db   :  { %v1445_v47 = vmul.f32 %v1441_v14, %v2260_v1  ;;  %v1963_v48 = vpop.f32.mrb[24].mxu1 }
 0x4dc   :  { %v1450_v49 = vadd.f32 %v1446_v46, %v2267_v2  ;;  %v1444_v50 = vmul.f32 %v1963_v48, %v1953_v43  ;;  %v1432_v51 = vpop.f32.mrb[25].mxu1  ;;  %v1517_v43 = vpop.permute.xlu1 %1516  ;;  %v517_v46 = vmul.f32 %v506_v63, %v2565_v8  ;;  %v518_v48 = vmul.f32 %v510_v6, %v2569_v12 }
 0x4dd   :  { %v1449_v52 = vadd.f32 %v1445_v47, %v2260_v1  ;;  %v1443_v53 = vmul.f32 %v1432_v51, %v1327_v9  ;;  %v516_v47 = vmul.f32 %v502_v27, %v2567_v11 }
 0x4de   :  { %v1448_v55 = vmul.f32 %v1444_v50, %v2272_v3  ;;  %v1513_v50 = vpop.permute.xlu0 %1512 }
 0x4df   :  { %v1453_v54 = vadd.f32 %v1450_v49, %v1449_v52  ;;  %v1447_v56 = vmul.f32 %v1443_v53, %v2255_v0 }
 0x4e0   :  { %v1452_v58 = vadd.f32 %v1448_v55, %v2272_v3  ;;  %v536_v55 = vadd.f32 %v522_v41, %v516_v47 }
 0x4e1   :  { %v1451_v57 = vadd.f32 %v1447_v56, %v2255_v0 }
 0x4e3   :  { %v1454_v59 = vadd.f32 %v1453_v54, %v1451_v57 }
 0x4e5   :  { %v1455_v60 = vadd.f32 %v1454_v59, %v1452_v58  ;;  %v1521_v59 = vpop.permute.xlu1 %1520 }
 0x4e7   :  { %v1456_v61 = vrot.slane %v1455_v60, 4 }
 0x4e9   :  { %v1457_v62 = vadd.f32 %v1456_v61, %v1455_v60 }
 0x4eb   :  { %v1458_v2 = vrot.slane %v1457_v62, 2 }
 0x4ed   :  { %v1459_v4 = vadd.f32 %v1458_v2, %v1457_v62 }
 0x4ef   :  { %v1460_v5 = vrot.slane %v1459_v4, 1 }
 0x4f1   :  { %v1461_v1 = vadd.f32 %v1460_v5, %v1459_v4 }
 0x4f3   :  { %v1462_v7 = vmul.f32 0.03125, %v1461_v1 }
 0x4f5   :  { %v1465_v16 = vsub.f32 %v1451_v57, %v1462_v7  ;;  %v1466_v17 = vsub.f32 %v1452_v58, %v1462_v7  ;;  %v1463_v18 = vsub.f32 %v1449_v52, %v1462_v7  ;;  %v1464_v19 = vsub.f32 %v1450_v49, %v1462_v7 }
 0x4f6   :  { %v519_v49 = vmul.f32 %v514_v32, %v2571_v13  ;;  %v537_v57 = vadd.f32 %v526_v34, %v517_v46  ;;  %v538_v58 = vadd.f32 %v530_v38, %v518_v48 }
 0x4f7   :  { %v1467_v20 = vmul.f32 %v1463_v18, %v1463_v18  ;;  %v1468_v0 = vmul.f32 %v1464_v19, %v1464_v19  ;;  %v1469_v21 = vmul.f32 %v1465_v16, %v1465_v16  ;;  %v1470_v23 = vmul.f32 %v1466_v17, %v1466_v17 }
 0x4f8   :  { %v539_v56 = vadd.f32 %v534_v40, %v519_v49 }
 0x4f9   :  { %v1471_v3 = vadd.f32 %v1468_v0, %v1467_v20 }
 0x4fb   :  { %v1472_v24 = vadd.f32 %v1471_v3, %v1469_v21 }
 0x4fd   :  { %v1473_v25 = vadd.f32 %v1472_v24, %v1470_v23 }
 0x4ff   :  { %v1474_v26 = vrot.slane %v1473_v25, 4 }
 0x501   :  { %v1475_v29 = vadd.f32 %v1474_v26, %v1473_v25 }
 0x503   :  { %v1476_v30 = vrot.slane %v1475_v29, 2 }
 0x505   :  { %v1477_v31 = vadd.f32 %v1476_v30, %v1475_v29 }
 0x507   :  { %v1478_v33 = vrot.slane %v1477_v31, 1 }
 0x509   :  { %v1479_v35 = vadd.f32 %v1478_v33, %v1477_v31 }
 0x50b   :  { %v1480_v37 = vmul.f32 0.03125, %v1479_v35 }
 0x50d   :  { %v1481_v39 = vadd.f32 1e-05, %v1480_v37 }
 0x50f   :  { %2193 = vrsqrt.f32 %v1481_v39 }
 0x519   :  { %v2194_v9 = vpop.eup %2193 }
 0x51a   :  { %v1483_v44 = vmul.f32 %v2194_v9, %v1463_v18  ;;  %v1485_v10 = vmul.f32 %v2194_v9, %v1465_v16  ;;  %v1486_v45 = vmul.f32 %v2194_v9, %v1466_v17  ;;  %v1484_v14 = vmul.f32 %v2194_v9, %v1464_v19 }
 0x51c   :  { %v1503_v51 = vmul.f32 %v1489_v15, %v1483_v44  ;;  %v1505_v52 = vmul.f32 %v1497_v22, %v1485_v10  ;;  %v1506_v53 = vmul.f32 %v1501_v28, %v1486_v45  ;;  %v1504_v54 = vmul.f32 %v1493_v36, %v1484_v14 }
 0x51e   :  { %v1523_v60 = vadd.f32 %v1509_v42, %v1503_v51  ;;  %v1525_v8 = vadd.f32 %v1517_v43, %v1505_v52  ;;  %v1526_v61 = vadd.f32 %v1521_v59, %v1506_v53  ;;  %v1524_v11 = vadd.f32 %v1513_v50, %v1504_v54 }
 0x520   :  { %v1527_v12 = vadd.f32 %v1523_v60, %v536_v55  ;;  %v1529_v62 = vadd.f32 %v1525_v8, %v538_v58  ;;  %v1530_v13 = vadd.f32 %v1526_v61, %v539_v56  ;;  %v1528_v63 = vadd.f32 %v1524_v11, %v537_v57 }
 0x522   :  { %1531 = vst [vmem:[#allocation2] sm:$0xff] %v1527_v12  ;;  %1533 = vst [vmem:[#allocation2 + $0x10] sm:$0xff] %v1529_v62 }
 0x523   :  { %1534 = vst [vmem:[#allocation2 + $0x18] sm:$0xff] %v1530_v13  ;;  %1532 = vst [vmem:[#allocation2 + $0x8] sm:$0xff] %v1528_v63 }
 0x524   :  { %2206 = shalt.err (!%p2203_p4)
}
 0x525   :  { %s2207_s27 = scalar_lea.hbm %s2664_s3, 512 }
 0x526   :  { %p2208_p5 = scmp.ne.s32.totalorder %s2664_s3, %s2207_s27  ;;  %p2211_p6 = scmp.lt.u32.totalorder %s2207_s27, %s2664_s3 }
 0x528   :  { %p2213_p7 = pnand %p2211_p6, %p2208_p5 }
 0x52a   :  { %2216 = shalt.err (!%p2213_p7)
}
 0x52b   :  { %s2230_s5 = smov 128   ;;  %s2231_s6 = smov 8  }
 0x52c   :  { %1546 = dma.vmem_to_hbm [thread:$0]  %s1541_s23, 512, %s2664_s3, [#allocation3], %s2230_s5, %s2230_s5, %s2231_s6  }
 0x52d   :  { %2217 = dma.done.wait [#allocation3], 512  }
 0x52e   :  { %2218 = vsyncadd [#allocation3], 4294966784 }
 0x52f   :  { %1550 = vsyncpa [#allocation3], 1 }

</bundles_post_ra>
